<compile_context>
chip_gen: v7x
topology: tpu7x:2x2x1
jax: 0.10.0
libtpu: 0.0.40
codegen_flags: <defaults>
</compile_context>

<pallas_src>
import jax
import jax.numpy as jnp
from jax.experimental import pallas as pl
from jax.experimental.pallas import tpu as pltpu

HIDDEN = 128
LANE = 128          # TPU lane width: pad action dim so stores are lane-dense
TM = 256            # batch tile (only used when B > TM)
NEG_BIAS = -1e30    # bias for padded action columns -> softmax weight exactly 0


def policy_kernel(x_ref, w1_ref, b1_ref, w2_ref, b2_ref, out_ref):
    # fc1 + ReLU: bf16 operands on the MXU, f32 accumulation.
    h = jnp.dot(x_ref[...], w1_ref[...], preferred_element_type=jnp.float32)
    h = jnp.maximum(h + b1_ref[...], 0.0)

    # fc2 logits on the lane-padded action dim (padded bias = -1e30).
    logits = jnp.dot(h.astype(w2_ref.dtype), w2_ref[...],
                     preferred_element_type=jnp.float32)
    logits = logits + b2_ref[...]

    # Numerically stable softmax over the (padded) action axis (PyTorch dim=1).
    m = jnp.max(logits, axis=-1, keepdims=True)
    e = jnp.exp(logits - m)
    denom = jnp.sum(e, axis=-1, keepdims=True)
    # approx reciprocal -> EUP (otherwise idle); padded columns come out as 0.
    out_ref[...] = (e * pl.reciprocal(denom, approx=True)).astype(out_ref.dtype)


def _pad_cols(a, new_cols, value=0.0):
    pad = new_cols - a.shape[-1]
    if pad == 0:
        return a
    return jnp.pad(a, ((0, 0), (0, pad)), constant_values=value)


@jax.jit
def policy_forward(state, w1, b1, w2, b2):
    """state [B,S] f32; w1 [S,128]; b1 [1,128]; w2 [128,A]; b2 [1,A] -> [B,A] probs."""
    B, S = state.shape
    A = w2.shape[1]
    A_pad = pl.cdiv(A, LANE) * LANE

    # bf16 matmul operands (f32 accumulation in-kernel); biases stay f32.
    x = state.astype(jnp.bfloat16)
    w1b = w1.astype(jnp.bfloat16)
    w2b = _pad_cols(w2, A_pad, 0.0).astype(jnp.bfloat16)           # zero-pad weights
    b1f = b1.astype(jnp.float32)
    b2f = _pad_cols(b2.astype(jnp.float32), A_pad, NEG_BIAS)        # -inf-ish pad bias

    if B <= TM:
        # Small batch: gridless call, whole arrays resident in VMEM.
        vmem = pl.BlockSpec(memory_space=pltpu.MemorySpace.VMEM)
        probs = pl.pallas_call(
            policy_kernel,
            out_shape=jax.ShapeDtypeStruct((B, A_pad), jnp.float32),
            in_specs=[vmem] * 5,
            out_specs=vmem,
        )(x, w1b, b1f, w2b, b2f)
        return probs[:, :A]

    # Large batch: tile over B only. Weights/biases map to block (0,0) every
    # step -> DMA'd once and held resident; batch axis "parallel" for megacore.
    B_pad = pl.cdiv(B, TM) * TM
    if B_pad != B:
        x = jnp.pad(x, ((0, B_pad - B), (0, 0)))
    probs = pl.pallas_call(
        policy_kernel,
        out_shape=jax.ShapeDtypeStruct((B_pad, A_pad), jnp.float32),
        grid_spec=pltpu.PrefetchScalarGridSpec(
            num_scalar_prefetch=0,
            grid=(B_pad // TM,),
            in_specs=[
                pl.BlockSpec((TM, S), lambda i: (i, 0)),
                pl.BlockSpec((S, HIDDEN), lambda i: (0, 0)),
                pl.BlockSpec((1, HIDDEN), lambda i: (0, 0)),
                pl.BlockSpec((HIDDEN, A_pad), lambda i: (0, 0)),
                pl.BlockSpec((1, A_pad), lambda i: (0, 0)),
            ],
            out_specs=pl.BlockSpec((TM, A_pad), lambda i: (i, 0)),
        ),
        compiler_params=pltpu.CompilerParams(
            dimension_semantics=("parallel",)),
    )(x, w1b, b1f, w2b, b2f)
    return probs[:B, :A]


def init_params(key, state_size, action_size):
    """Deterministic init mirroring nn.Linear's U(-1/sqrt(fan_in), 1/sqrt(fan_in))."""
    k1, k2, k3, k4 = jax.random.split(key, 4)
    lim1 = 1.0 / jnp.sqrt(jnp.float32(state_size))
    lim2 = 1.0 / jnp.sqrt(jnp.float32(HIDDEN))
    w1 = jax.random.uniform(k1, (state_size, HIDDEN), jnp.float32, -lim1, lim1)
    b1 = jax.random.uniform(k2, (1, HIDDEN), jnp.float32, -lim1, lim1)
    w2 = jax.random.uniform(k3, (HIDDEN, action_size), jnp.float32, -lim2, lim2)
    b2 = jax.random.uniform(k4, (1, action_size), jnp.float32, -lim2, lim2)
    return w1, b1, w2, b2


def _ref_forward(state, w1, b1, w2, b2):
    return jax.nn.softmax(jnp.maximum(state @ w1 + b1, 0.0) @ w2 + b2, axis=1)


if __name__ == "__main__":
    batch, state_size, action_size = 8, 16, 4

    key = jax.random.PRNGKey(0)
    k_params, k_state = jax.random.split(key)
    w1, b1, w2, b2 = init_params(k_params, state_size, action_size)
    state = jax.random.normal(k_state, (batch, state_size), jnp.float32)

    # Small-batch (gridless) path.
    probs = policy_forward(state, w1, b1, w2, b2)
    jax.block_until_ready(probs)

    ref = _ref_forward(state, w1, b1, w2, b2)
    assert probs.shape == (batch, action_size)
    # bf16 matmul operands + approx reciprocal loosen the tolerance vs pure f32.
    assert jnp.allclose(probs, ref, atol=2e-2), "mismatch vs reference (small batch)"
    assert jnp.allclose(jnp.sum(probs, axis=1), 1.0, atol=1e-2)

    # Also exercise the batch-tiled ("parallel" over B, ragged pad) path.
    big_state = jax.random.normal(jax.random.PRNGKey(1), (600, state_size), jnp.float32)
    big_probs = policy_forward(big_state, w1, b1, w2, b2)
    jax.block_until_ready(big_probs)
    big_ref = _ref_forward(big_state, w1, b1, w2, b2)
    assert big_probs.shape == (600, action_size)
    assert jnp.allclose(big_probs, big_ref, atol=2e-2), "mismatch vs reference (tiled)"
    assert jnp.allclose(jnp.sum(big_probs, axis=1), 1.0, atol=1e-2)

    print("KERNEL_OK")
</pallas_src>

<mosaic_0001>
module attributes {stable_mosaic.version = 11 : i64} {
  func.func @policy_kernel(%arg0: memref<8x16xbf16, #tpu.memory_space<vmem>>, %arg1: memref<16x128xbf16, #tpu.memory_space<vmem>>, %arg2: memref<1x128xf32, #tpu.memory_space<vmem>>, %arg3: memref<128x128xbf16, #tpu.memory_space<vmem>>, %arg4: memref<1x128xf32, #tpu.memory_space<vmem>>, %arg5: memref<8x128xf32, #tpu.memory_space<vmem>>) attributes {dimension_semantics = [], scalar_prefetch = 0 : i64, scratch_operands = 0 : i64, tpu.core_type = #tpu.core_type<tc>} {
    %c0 = arith.constant 0 : index
    %c0_0 = arith.constant 0 : index
    %0 = vector.load %arg0[%c0, %c0_0] : memref<8x16xbf16, #tpu.memory_space<vmem>>, vector<8x16xbf16>
    %c0_1 = arith.constant 0 : index
    %c0_2 = arith.constant 0 : index
    %1 = vector.load %arg1[%c0_1, %c0_2] : memref<16x128xbf16, #tpu.memory_space<vmem>>, vector<16x128xbf16>
    %cst = arith.constant dense<0.000000e+00> : vector<8x128xf32>
    %2 = tpu.matmul %0, %1, %cst {dimension_numbers = #tpu.dot_dimension_numbers<[1], [0], [0], [1], [0, 0, 1, 1], [], []>} : vector<8x16xbf16>, vector<16x128xbf16>, vector<8x128xf32> -> vector<8x128xf32>
    %c0_3 = arith.constant 0 : index
    %c0_4 = arith.constant 0 : index
    %3 = vector.load %arg2[%c0_3, %c0_4] : memref<1x128xf32, #tpu.memory_space<vmem>>, vector<1x128xf32>
    %4 = vector.broadcast %3 : vector<1x128xf32> to vector<8x128xf32>
    %5 = arith.addf %2, %4 : vector<8x128xf32>
    %cst_5 = arith.constant 0.000000e+00 : f32
    %6 = vector.broadcast %cst_5 : f32 to vector<8x128xf32>
    %7 = arith.maximumf %5, %6 : vector<8x128xf32>
    %8 = arith.truncf %7 : vector<8x128xf32> to vector<8x128xbf16>
    %c0_6 = arith.constant 0 : index
    %c0_7 = arith.constant 0 : index
    %9 = vector.load %arg3[%c0_6, %c0_7] : memref<128x128xbf16, #tpu.memory_space<vmem>>, vector<128x128xbf16>
    %cst_8 = arith.constant dense<0.000000e+00> : vector<8x128xf32>
    %10 = tpu.matmul %8, %9, %cst_8 {dimension_numbers = #tpu.dot_dimension_numbers<[1], [0], [0], [1], [0, 0, 1, 1], [], []>} : vector<8x128xbf16>, vector<128x128xbf16>, vector<8x128xf32> -> vector<8x128xf32>
    %c0_9 = arith.constant 0 : index
    %c0_10 = arith.constant 0 : index
    %11 = vector.load %arg4[%c0_9, %c0_10] : memref<1x128xf32, #tpu.memory_space<vmem>>, vector<1x128xf32>
    %12 = vector.broadcast %11 : vector<1x128xf32> to vector<8x128xf32>
    %13 = arith.addf %10, %12 : vector<8x128xf32>
    %cst_11 = arith.constant dense<0xFF800000> : vector<8xf32>
    %14 = vector.multi_reduction <maximumf>, %13, %cst_11 [1] : vector<8x128xf32> to vector<8xf32>
    %15 = vector.shape_cast %14 : vector<8xf32> to vector<8x1xf32>
    %16 = vector.broadcast %15 : vector<8x1xf32> to vector<8x128xf32>
    %17 = arith.subf %13, %16 : vector<8x128xf32>
    %18 = math.exp %17 : vector<8x128xf32>
    %cst_12 = arith.constant dense<0.000000e+00> : vector<8xf32>
    %19 = vector.multi_reduction <add>, %18, %cst_12 [1] : vector<8x128xf32> to vector<8xf32>
    %20 = vector.shape_cast %19 : vector<8xf32> to vector<8x1xf32>
    %21 = tpu.reciprocal %20 {approx = true} : vector<8x1xf32> -> vector<8x1xf32>
    %22 = vector.broadcast %21 : vector<8x1xf32> to vector<8x128xf32>
    %23 = arith.mulf %18, %22 : vector<8x128xf32>
    %c0_13 = arith.constant 0 : index
    %c0_14 = arith.constant 0 : index
    %24 = vector.load %arg5[%c0_13, %c0_14] : memref<8x128xf32, #tpu.memory_space<vmem>>, vector<8x128xf32>
    tpu.vector_store %arg5[%c0_13, %c0_14], %23 {strides = array<i32>} : memref<8x128xf32, #tpu.memory_space<vmem>>, vector<8x128xf32>,
    return
  }
}

</mosaic_0001>

<bundles_post_ra>
// kernel: policy_forward.1
= control target key start
LH: loop header
LB: loop body
LE: loop exit
PB: predicated region body
PF: predicated region fallthrough
CT: control target
= control target key end

     0   :  { %v272_v0 = vmov 0.0   ;;  %vm273_vm0 = vmmov 0   ;;  %vm37_vm1 = vcmask 130048   ;;  %s343_s1 = inlined_call_operand.vmem [shape: bf16[16,128], index: 1, kind: input, shape index: {}]   ;;  %s344_s0 = inlined_call_operand.vmem [shape: bf16[8,16], index: 0, kind: input, shape index: {}]   ;;  %s345_s3 = inlined_call_operand.vmem [shape: bf16[128,128], index: 3, kind: input, shape index: {}]   ;;  %s346_s2 = inlined_call_operand.vmem [shape: f32[1,128], index: 2, kind: input, shape index: {}]   ;;  %s347_s4 = inlined_call_operand.vmem [shape: f32[1,128], index: 4, kind: input, shape index: {}]   ;;  %s348_s5 = inlined_call_operand.vmem [shape: f32[8,128], index: 5, kind: output, shape index: {}]  }
   0x1   :  { %231 = vmatprep.subr.bf16.mxu0 %v272_v0  ;;  %v259_v1 = vld [vmem:[%s343_s1] sm:$0xff]   ;;  %233 = vmatprep.mubr.msk.bf16.mxu0 %vm273_vm0, %v272_v0  ;;  %v261_v4 = vld [vmem:[%s345_s3 + $0x8] sm:$0xff]   ;;  %v262_v5 = vld [vmem:[%s345_s3 + $0x10] sm:$0xff]  }
   0x2   :  { %v21_v2 = vld [vmem:[%s344_s0] sm:$0xf]  ;;  %237 = vmatprep.subr.bf16.mxu1 %v272_v0  ;;  %253 = vmatprep.mubr.msk.bf16.mxu1 %vm273_vm0, %v272_v0  ;;  %v263_v6 = vld [vmem:[%s345_s3 + $0x18] sm:$0xff]   ;;  %v265_v8 = vld [vmem:[%s345_s3 + $0x28] sm:$0xff]  }
   0x3   :  { %232 = vmatpush3.bf16.msra.mxu0 %v259_v1  ;;  %v260_v3 = vld [vmem:[%s345_s3] sm:$0xff]   ;;  %v266_v9 = vld [vmem:[%s345_s3 + $0x30] sm:$0xff]   ;;  %v267_v10 = vld [vmem:[%s345_s3 + $0x38] sm:$0xff]  }
   0x4   :  { %238 = vmatpush3.bf16.msra.mxu1 %v260_v3  ;;  %v264_v7 = vld [vmem:[%s345_s3 + $0x20] sm:$0xff]  }
   0x5   :  { %239 = vmatprep.subr.bf16.mxu1 %v272_v0  ;;  %v208_v11 = vld [vmem:[%s346_s2] ss:$0 sm:$0xff] }
   0x6   :  { %234 = vmatmul.mubr.msk.bf16.vlgmr.msra.gmra.mrb[0].mxu0 %vm37_vm1, %v21_v2  ;;  %v211_v19 = vld [vmem:[%s347_s4] ss:$0 sm:$0xff] }
   0x8   :  { %240 = vmatpush3.bf16.msra.mxu1 %v261_v4 }
   0x9   :  { %241 = vmatprep.subr.bf16.mxu1 %v272_v0 }
   0xc   :  { %242 = vmatpush3.bf16.msra.mxu1 %v262_v5 }
   0xd   :  { %243 = vmatprep.subr.bf16.mxu1 %v272_v0 }
  0x10   :  { %244 = vmatpush3.bf16.msra.mxu1 %v263_v6 }
  0x11   :  { %245 = vmatprep.subr.bf16.mxu1 %v272_v0 }
  0x14   :  { %246 = vmatpush3.bf16.msra.mxu1 %v264_v7 }
  0x15   :  { %247 = vmatprep.subr.bf16.mxu1 %v272_v0 }
  0x18   :  { %248 = vmatpush3.bf16.msra.mxu1 %v265_v8 }
  0x19   :  { %249 = vmatprep.subr.bf16.mxu1 %v272_v0 }
  0x1c   :  { %250 = vmatpush3.bf16.msra.mxu1 %v266_v9 }
  0x1d   :  { %251 = vmatprep.subr.bf16.mxu1 %v272_v0 }
  0x20   :  { %252 = vmatpush3.bf16.msra.mxu1 %v267_v10 }
  0xd9   :  { %v75_v12 = vpop.f32.mrb[0].mxu0 }
  0xda   :  { %v76_v13 = vadd.f32 %v208_v11, %v75_v12  ;;  %v235_v14 = vpop.f32.mrb[1].mxu0 }
  0xdb   :  { %v78_v15 = vpop.f32.mrb[2].mxu0 }
  0xdc   :  { %v81_v16 = vmax.f32 %v76_v13, 0.0  ;;  %v236_v17 = vpop.f32.mrb[3].mxu0 }
  0xde   :  { %v82_v18 = vpack.c.bf16 %v81_v16, %v81_v16 }
  0xe0   :  { %254 = vmatmul.mubr.bf16.vlgmr.msra.gmra.mrb[0].mxu1 %v82_v18 }
 0x1b3   :  { %v188_v20 = vpop.f32.mrb[0].mxu1 }
 0x1b4   :  { %v189_v21 = vadd.f32 %v211_v19, %v188_v20  ;;  %v255_v22 = vpop.f32.mrb[1].mxu1 }
 0x1b5   :  { %v191_v23 = vpop.f32.mrb[2].mxu1 }
 0x1b6   :  { %194 = vmax.xlane.f32.xlu0 %v189_v21  ;;  %v256_v24 = vpop.f32.mrb[3].mxu1 }
 0x243   :  { %v195_v25 = vpop.xlane.xlu0 %194 }
 0x244   :  { %v196_v26 = vsub.f32 %v189_v21, %v195_v25 }
 0x246   :  { %v197_v27 = vmul.f32 1.442695, %v196_v26 }
 0x248   :  { %268 = vpow2.f32 %v197_v27 }
 0x252   :  { %v269_v28 = vpop.eup %268 }
 0x253   :  { %199 = vadd.xlane.f32.xlu0 %v269_v28 }
 0x2e0   :  { %v200_v29 = vpop.xlane.xlu0 %199 }
 0x2e1   :  { %270 = vrcp.f32 %v200_v29 }
 0x2eb   :  { %v271_v30 = vpop.eup %270 }
 0x2ec   :  { %v202_v31 = vmul.f32 %v271_v30, %v269_v28 }
 0x2ee   :  { %203 = vst [vmem:[%s348_s5] sm:$0xff] %v202_v31 }

</bundles_post_ra>
